<compile_context>
chip_gen: v6e
topology: v6e:2x2x1
jax: 0.10.0
libtpu: 0.0.40
codegen_flags: <defaults>
</compile_context>

<pallas_src>
import jax
import jax.numpy as jnp
from jax import lax
from jax.experimental import pallas as pl
from jax.experimental.pallas import tpu as pltpu


def _round_up(x, m):
    return (x + m - 1) // m * m


def bow_kernel(x_ref, len_ref, emb_ref, o_ref):
    # x_ref:   (TB, S)   int32 — token ids for TB batch rows
    # len_ref: (TB, 1)   f32   — sequence lengths for those rows
    # emb_ref: (Vp, Hp)  f32   — zero-padded embedding table (resident)
    # o_ref:   (TB, Hp)  f32   — mean-bag-of-words output slab
    idx = x_ref[...]                                    # (TB, S)
    TB, S = idx.shape
    Vp = emb_ref.shape[0]

    # Vocab ids on the 128-lane axis; counts accumulated with VPU compare+add.
    lane_iota = lax.broadcasted_iota(jnp.int32, (TB, Vp), 1)
    counts = jnp.zeros((TB, Vp), jnp.float32)
    # S is small and static: this unrolls at trace time into S lane-dense
    # compare+add steps (no XLU reduce, full 128-lane occupancy).
    for t in range(S):
        counts = counts + (lane_iota == idx[:, t:t + 1]).astype(jnp.float32)

    # sum_t emb[x[b, t]]  ==  counts @ emb   -> (TB, Hp)   (MXU, f32 acc)
    summed = jnp.dot(counts, emb_ref[...], preferred_element_type=jnp.float32)

    # Hoisted once per tile; exact reciprocal keeps parity with the f32 ref.
    inv_len = pl.reciprocal(len_ref[...], approx=False)  # (TB, 1)
    o_ref[...] = summed * inv_len


def bag_of_words(x, length, emb_table, *, block_b=128):
    """x: (B, S) int ids, length: (B,), emb_table: (V, H) f32 -> (B, H) f32."""
    B, S = x.shape
    V, H = emb_table.shape

    TB = min(block_b, _round_up(B, 8))        # batch tile, multiple of 8
    Bp = _round_up(B, TB)
    Vp = _round_up(V, 128)                    # MXU K-dim / lane alignment
    Hp = _round_up(H, 128)                    # lane-dense output stores

    # Zero-pad: extra vocab rows are all-zero (never counted anyway since
    # token ids < V), extra batch rows use length 1 to avoid div-by-zero.
    x_p = jnp.zeros((Bp, S), jnp.int32).at[:B].set(x.astype(jnp.int32))
    len_p = jnp.ones((Bp, 1), jnp.float32).at[:B, 0].set(
        length.astype(jnp.float32))
    emb_p = jnp.zeros((Vp, Hp), jnp.float32).at[:V, :H].set(
        emb_table.astype(jnp.float32))

    # VMEM budget: double-buffered x/len/out blocks + resident table.
    block_bytes = 2 * (TB * S * 4 + TB * 4 + TB * Hp * 4) + Vp * Hp * 4
    vmem_limit = min(max(2 * block_bytes, 32 * 1024 * 1024), 64 * 1024 * 1024)

    out_p = pl.pallas_call(
        bow_kernel,
        out_shape=jax.ShapeDtypeStruct((Bp, Hp), jnp.float32),
        grid=(Bp // TB,),
        in_specs=[
            pl.BlockSpec((TB, S), lambda b: (b, 0)),   # token-id slab
            pl.BlockSpec((TB, 1), lambda b: (b, 0)),   # lengths
            pl.BlockSpec((Vp, Hp), lambda b: (0, 0)),  # full (padded) table
        ],
        out_specs=pl.BlockSpec((TB, Hp), lambda b: (b, 0)),
        compiler_params=pltpu.CompilerParams(
            dimension_semantics=("parallel",),
            vmem_limit_bytes=vmem_limit),
    )(x_p, len_p, emb_p)

    return out_p[:B, :H]


if __name__ == "__main__":
    B, S, V, H = 2, 8, 32, 32            # batch, seq, vocab size, hidden_dims
    pad_idx = 0                           # vocab.get_stoi()['<pad>']

    key = jax.random.PRNGKey(0)
    k_emb, k_x, k_len = jax.random.split(key, 3)

    # nn.init.xavier_uniform_ on the (V, H) embedding weight: U(-a, a),
    # a = sqrt(6 / (fan_in + fan_out)).  xavier_uniform_ overwrites the
    # padding row and F.embedding's padding_idx does not change the forward
    # pass, so no special-casing of the pad row is needed.
    a = (6.0 / (V + H)) ** 0.5
    emb_table = jax.random.uniform(k_emb, (V, H), jnp.float32,
                                   minval=-a, maxval=a)

    # Deterministic inputs: random token ids, random lengths, pad the tail.
    length = jax.random.randint(k_len, (B,), 1, S + 1)
    x = jax.random.randint(k_x, (B, S), 1, V)
    pos = jnp.arange(S)[None, :]
    x = jnp.where(pos < length[:, None], x, pad_idx).astype(jnp.int32)

    out = bag_of_words(x, length, emb_table)
    out = jax.block_until_ready(out)

    # Pure-JAX reference (matches PyTorch semantics exactly).
    ref = emb_table[x].sum(axis=1) / length[:, None].astype(jnp.float32)
    assert out.shape == (B, H)
    assert jnp.allclose(out, ref, rtol=1e-5, atol=1e-5)

    print("KERNEL_OK")
</pallas_src>

<mosaic_0001>
module attributes {stable_mosaic.version = 11 : i64} {
  func.func @bow_kernel(%arg0: i32, %arg1: memref<8x8xi32, #tpu.memory_space<vmem>>, %arg2: memref<8x1xf32, #tpu.memory_space<vmem>>, %arg3: memref<128x128xf32, #tpu.memory_space<vmem>>, %arg4: memref<8x128xf32, #tpu.memory_space<vmem>>) attributes {dimension_semantics = [#tpu.dimension_semantics<parallel>], iteration_bounds = array<i64: 1>, scalar_prefetch = 0 : i64, scratch_operands = 0 : i64, tpu.core_type = #tpu.core_type<tc>, window_params = [{transform_indices = @transform_0, window_bounds = array<i64: 8, 8>}, {transform_indices = @transform_1, window_bounds = array<i64: 8, 1>}, {pipeline_mode = #tpu.pipeline_mode<synchronous>, transform_indices = @transform_2, window_bounds = array<i64: 128, 128>}, {transform_indices = @transform_3, window_bounds = array<i64: 8, 128>}]} {
    %c0 = arith.constant 0 : index
    %c0_0 = arith.constant 0 : index
    %0 = vector.load %arg1[%c0, %c0_0] : memref<8x8xi32, #tpu.memory_space<vmem>>, vector<8x8xi32>
    %1 = tpu.iota {dimensions = array<i32: 1>} : vector<8x128xi32>
    %cst = arith.constant 0.000000e+00 : f32
    %2 = vector.broadcast %cst : f32 to vector<8x128xf32>
    %3 = vector.extract_strided_slice %0 {offsets = [0, 0], sizes = [8, 1], strides = [1, 1]} : vector<8x8xi32> to vector<8x1xi32>
    %4 = vector.broadcast %3 : vector<8x1xi32> to vector<8x128xi32>
    %5 = arith.cmpi eq, %1, %4 : vector<8x128xi32>
    %6 = arith.extui %5 : vector<8x128xi1> to vector<8x128xi32>
    %7 = arith.sitofp %6 : vector<8x128xi32> to vector<8x128xf32>
    %8 = arith.addf %2, %7 : vector<8x128xf32>
    %9 = vector.extract_strided_slice %0 {offsets = [0, 1], sizes = [8, 1], strides = [1, 1]} : vector<8x8xi32> to vector<8x1xi32>
    %10 = vector.broadcast %9 : vector<8x1xi32> to vector<8x128xi32>
    %11 = arith.cmpi eq, %1, %10 : vector<8x128xi32>
    %12 = arith.extui %11 : vector<8x128xi1> to vector<8x128xi32>
    %13 = arith.sitofp %12 : vector<8x128xi32> to vector<8x128xf32>
    %14 = arith.addf %8, %13 : vector<8x128xf32>
    %15 = vector.extract_strided_slice %0 {offsets = [0, 2], sizes = [8, 1], strides = [1, 1]} : vector<8x8xi32> to vector<8x1xi32>
    %16 = vector.broadcast %15 : vector<8x1xi32> to vector<8x128xi32>
    %17 = arith.cmpi eq, %1, %16 : vector<8x128xi32>
    %18 = arith.extui %17 : vector<8x128xi1> to vector<8x128xi32>
    %19 = arith.sitofp %18 : vector<8x128xi32> to vector<8x128xf32>
    %20 = arith.addf %14, %19 : vector<8x128xf32>
    %21 = vector.extract_strided_slice %0 {offsets = [0, 3], sizes = [8, 1], strides = [1, 1]} : vector<8x8xi32> to vector<8x1xi32>
    %22 = vector.broadcast %21 : vector<8x1xi32> to vector<8x128xi32>
    %23 = arith.cmpi eq, %1, %22 : vector<8x128xi32>
    %24 = arith.extui %23 : vector<8x128xi1> to vector<8x128xi32>
    %25 = arith.sitofp %24 : vector<8x128xi32> to vector<8x128xf32>
    %26 = arith.addf %20, %25 : vector<8x128xf32>
    %27 = vector.extract_strided_slice %0 {offsets = [0, 4], sizes = [8, 1], strides = [1, 1]} : vector<8x8xi32> to vector<8x1xi32>
    %28 = vector.broadcast %27 : vector<8x1xi32> to vector<8x128xi32>
    %29 = arith.cmpi eq, %1, %28 : vector<8x128xi32>
    %30 = arith.extui %29 : vector<8x128xi1> to vector<8x128xi32>
    %31 = arith.sitofp %30 : vector<8x128xi32> to vector<8x128xf32>
    %32 = arith.addf %26, %31 : vector<8x128xf32>
    %33 = vector.extract_strided_slice %0 {offsets = [0, 5], sizes = [8, 1], strides = [1, 1]} : vector<8x8xi32> to vector<8x1xi32>
    %34 = vector.broadcast %33 : vector<8x1xi32> to vector<8x128xi32>
    %35 = arith.cmpi eq, %1, %34 : vector<8x128xi32>
    %36 = arith.extui %35 : vector<8x128xi1> to vector<8x128xi32>
    %37 = arith.sitofp %36 : vector<8x128xi32> to vector<8x128xf32>
    %38 = arith.addf %32, %37 : vector<8x128xf32>
    %39 = vector.extract_strided_slice %0 {offsets = [0, 6], sizes = [8, 1], strides = [1, 1]} : vector<8x8xi32> to vector<8x1xi32>
    %40 = vector.broadcast %39 : vector<8x1xi32> to vector<8x128xi32>
    %41 = arith.cmpi eq, %1, %40 : vector<8x128xi32>
    %42 = arith.extui %41 : vector<8x128xi1> to vector<8x128xi32>
    %43 = arith.sitofp %42 : vector<8x128xi32> to vector<8x128xf32>
    %44 = arith.addf %38, %43 : vector<8x128xf32>
    %45 = vector.extract_strided_slice %0 {offsets = [0, 7], sizes = [8, 1], strides = [1, 1]} : vector<8x8xi32> to vector<8x1xi32>
    %46 = vector.broadcast %45 : vector<8x1xi32> to vector<8x128xi32>
    %47 = arith.cmpi eq, %1, %46 : vector<8x128xi32>
    %48 = arith.extui %47 : vector<8x128xi1> to vector<8x128xi32>
    %49 = arith.sitofp %48 : vector<8x128xi32> to vector<8x128xf32>
    %50 = arith.addf %44, %49 : vector<8x128xf32>
    %c0_1 = arith.constant 0 : index
    %c0_2 = arith.constant 0 : index
    %51 = vector.load %arg3[%c0_1, %c0_2] : memref<128x128xf32, #tpu.memory_space<vmem>>, vector<128x128xf32>
    %cst_3 = arith.constant dense<0.000000e+00> : vector<8x128xf32>
    %52 = tpu.matmul %50, %51, %cst_3 {dimension_numbers = #tpu.dot_dimension_numbers<[1], [0], [0], [1], [0, 0, 1, 1], [], []>} : vector<8x128xf32>, vector<128x128xf32>, vector<8x128xf32> -> vector<8x128xf32>
    %c0_4 = arith.constant 0 : index
    %c0_5 = arith.constant 0 : index
    %53 = vector.load %arg2[%c0_4, %c0_5] : memref<8x1xf32, #tpu.memory_space<vmem>>, vector<8x1xf32>
    %54 = tpu.reciprocal %53 : vector<8x1xf32> -> vector<8x1xf32>
    %55 = vector.broadcast %54 : vector<8x1xf32> to vector<8x128xf32>
    %56 = arith.mulf %52, %55 : vector<8x128xf32>
    %c0_6 = arith.constant 0 : index
    %c0_7 = arith.constant 0 : index
    %57 = vector.load %arg4[%c0_6, %c0_7] : memref<8x128xf32, #tpu.memory_space<vmem>>, vector<8x128xf32>
    tpu.vector_store %arg4[%c0_6, %c0_7], %56 {strides = array<i32>} : memref<8x128xf32, #tpu.memory_space<vmem>>, vector<8x128xf32>,
    return
  }
  func.func @transform_0(%arg0: i32) -> (i32, i32) {
    %c0_i32 = arith.constant 0 : i32
    %c0_i32_0 = arith.constant 0 : i32
    return %arg0, %c0_i32 : i32, i32
  }
  func.func @transform_1(%arg0: i32) -> (i32, i32) {
    %c0_i32 = arith.constant 0 : i32
    %c0_i32_0 = arith.constant 0 : i32
    return %arg0, %c0_i32 : i32, i32
  }
  func.func @transform_2(%arg0: i32) -> (i32, i32) {
    %c0_i32 = arith.constant 0 : i32
    %c0_i32_0 = arith.constant 0 : i32
    %c0_i32_1 = arith.constant 0 : i32
    return %c0_i32, %c0_i32_0 : i32, i32
  }
  func.func @transform_3(%arg0: i32) -> (i32, i32) {
    %c0_i32 = arith.constant 0 : i32
    %c0_i32_0 = arith.constant 0 : i32
    return %arg0, %c0_i32 : i32, i32
  }
}

</mosaic_0001>

<bundles_post_ra>
// kernel: tpu_custom_call.1
= control target key start
LH: loop header
LB: loop body
LE: loop exit
PB: predicated region body
PF: predicated region fallthrough
CT: control target
= control target key end

     0   :  { %8 = vsyncpa [#allocation3], 0  ;;  %s398_s0 = inlined_call_operand.vmem [shape: s32[8,8], index: 0, kind: input, shape index: {}]   ;;  %s399_s1 = inlined_call_operand.vmem [shape: f32[8,1], index: 1, kind: input, shape index: {}]   ;;  %s400_s2 = inlined_call_operand.hbm [shape: f32[128,128], index: 2, kind: input, shape index: {}]   ;;  %s401_s3 = inlined_call_operand.hbm [shape: f32[8,128], index: 3, kind: output, shape index: {}]  }
   0x1   :  { %9 = vsyncpa [#allocation4], 0  ;;  %s327_s12 = smov [#allocation2]  }
   0x2   :  { %s19_s13 = sshll.u32 %s327_s12, 4  ;;  %s20_s13 = int_to_ptr.vmem [resolvable:$true] %s19_s13 }
   0x3   :  { %s291_s14 = scalar_lea.vmem %s20_s13, 2048  ;;  %p296_p1 = scmp.lt.s32.totalorder %s20_s13, %s20_s13 }
   0x4   :  { %p292_p0 = scmp.ne.s32.totalorder %s20_s13, %s291_s14  ;;  %p297_p2 = scmp.lt.s32.totalorder %s291_s14, %s291_s14 }
   0x6   :  { %p298_p3 = por %p297_p2, %p296_p1 }
   0x8   :  { %p299_p4 = pnand %p298_p3, %p292_p0 }
   0xa   :  { %302 = shalt.err (!%p299_p4)
}
   0xb   :  { %s328_s15 = smov 128   ;;  %s329_s16 = smov 8  }
   0xc   :  { %25 = dma.hbm_to_vmem [thread:$0]  %s400_s2, 2048, %s20_s13, [#allocation3], %s328_s15, %s328_s15, %s329_s16  }
   0xd   :  { %323 = dma.done.wait [#allocation3], 2048  }
   0xe   :  { %324 = vsyncadd [#allocation3], 4294965248  ;;  %v330_v0 = vmov 2   ;;  %v331_v1 = vmov 0   ;;  %v332_v2 = vmov 0.0   ;;  %v29_v3 = vld [vmem:[%s398_s0] sm:$0xff]  ;;  %v30_v28 = vlaneseq }
   0xf   :  { %274 = vset.pattern.permute.xlu1 %v330_v0  ;;  %272 = vset.pattern.permute.xlu0 %v331_v1  ;;  %v103_v4 = vld [vmem:[#allocation2 + $0x78] sm:$0xff]  ;;  %v102_v5 = vld [vmem:[#allocation2 + $0x70] sm:$0xff]  ;;  %v333_v6 = vmov 3   ;;  %v334_v7 = vmov 1   ;;  %v101_v8 = vld [vmem:[#allocation2 + $0x68] sm:$0xff]  ;;  %v335_v10 = vmov 4  }
  0x10   :  { %223 = vmatprep.subr.mxu0 %v332_v2  ;;  %47 = vperm.xlu1 %274, %v29_v3   ;;  %v100_v9 = vld [vmem:[#allocation2 + $0x60] sm:$0xff]  ;;  %v336_v11 = vmov 5   ;;  %v99_v12 = vld [vmem:[#allocation2 + $0x58] sm:$0xff]  ;;  %v98_v13 = vld [vmem:[#allocation2 + $0x50] sm:$0xff]  ;;  %v337_v14 = vmov 6   ;;  %v338_v18 = vmov 7  }
  0x11   :  { %33 = vperm.xlu0 %272, %v29_v3   ;;  %224 = vmatpush3.msra.mxu0 %v103_v4  ;;  %v97_v15 = vld [vmem:[#allocation2 + $0x48] sm:$0xff]  ;;  %v96_v16 = vld [vmem:[#allocation2 + $0x40] sm:$0xff]  ;;  %v95_v17 = vld [vmem:[#allocation2 + $0x38] sm:$0xff]  ;;  %vm339_vm0 = vmmov 0   ;;  %v31_v31 = vand.u32 127, %v30_v28 }
  0x12   :  { %225 = vmatprep.subr.mxu0 %v332_v2  ;;  %v94_v19 = vld [vmem:[#allocation2 + $0x30] sm:$0xff]  ;;  %v174_v20 = vld [vmem:[%s399_s1] sm:$0xff]  ;;  %255 = vmatprep.mubr.msk.f32.mxu0 %vm339_vm0, %v332_v2  ;;  %v93_v21 = vld [vmem:[#allocation2 + $0x28] sm:$0xff]  ;;  %s340_s1 = smov [#allocation5]  }
  0x13   :  { %226 = vmatpush3.msra.mxu0 %v102_v5  ;;  %281 = vrcp.f32 %v174_v20  ;;  %v92_v22 = vld [vmem:[#allocation2 + $0x20] sm:$0xff]  ;;  %v91_v23 = vld [vmem:[#allocation2 + $0x18] sm:$0xff]  ;;  %v90_v24 = vld [vmem:[#allocation2 + $0x10] sm:$0xff]  ;;  %s189_s21 = sshll.u32 %s340_s1, 4  ;;  %s190_s21 = int_to_ptr.vmem [resolvable:$true] %s189_s21 }
  0x14   :  { %275 = vset.pattern.permute.xlu1 %v333_v6  ;;  %227 = vmatprep.subr.mxu0 %v332_v2  ;;  %v89_v25 = vld [vmem:[#allocation2 + $0x8] sm:$0xff]  ;;  %v88_v26 = vld [vmem:[#allocation2] sm:$0xff]  ;;  %s303_s22 = scalar_lea.vmem %s190_s21, 128  ;;  %p308_p6 = scmp.lt.s32.totalorder %s190_s21, %s190_s21 }
  0x15   :  { %273 = vset.pattern.permute.xlu0 %v334_v7  ;;  %54 = vperm.xlu1 %275, %v29_v3   ;;  %p304_p5 = scmp.ne.s32.totalorder %s190_s21, %s303_s22  ;;  %p309_p7 = scmp.lt.s32.totalorder %s303_s22, %s303_s22 }
  0x16   :  { %40 = vperm.xlu0 %273, %v29_v3   ;;  %228 = vmatpush3.msra.mxu0 %v101_v8 }
  0x17   :  { %229 = vmatprep.subr.mxu0 %v332_v2  ;;  %p310_p8 = por %p309_p7, %p308_p6 }
  0x18   :  { %230 = vmatpush3.msra.mxu0 %v100_v9 }
  0x19   :  { %276 = vset.pattern.permute.xlu1 %v335_v10  ;;  %231 = vmatprep.subr.mxu0 %v332_v2  ;;  %p311_p9 = pnand %p310_p8, %p304_p5 }
  0x1a   :  { %277 = vset.pattern.permute.xlu0 %v336_v11  ;;  %61 = vperm.xlu1 %276, %v29_v3  }
  0x1b   :  { %68 = vperm.xlu0 %277, %v29_v3   ;;  %232 = vmatpush3.msra.mxu0 %v99_v12 }
  0x1c   :  { %233 = vmatprep.subr.mxu0 %v332_v2 }
  0x1d   :  { %234 = vmatpush3.msra.mxu0 %v98_v13 }
  0x1e   :  { %278 = vset.pattern.permute.xlu1 %v337_v14  ;;  %235 = vmatprep.subr.mxu0 %v332_v2 }
  0x1f   :  { %75 = vperm.xlu1 %278, %v29_v3   ;;  %280 = vset.pattern.permute.xlu0 %v331_v1 }
  0x20   :  { %236 = vmatpush3.msra.mxu0 %v97_v15  ;;  %v282_v27 = vpop.eup %281 }
  0x21   :  { %237 = vmatprep.subr.mxu0 %v332_v2  ;;  %178 = vperm.xlu0 %280, %v282_v27  }
  0x22   :  { %238 = vmatpush3.msra.mxu0 %v96_v16 }
  0x23   :  { %279 = vset.pattern.permute.xlu1 %v338_v18  ;;  %239 = vmatprep.subr.mxu0 %v332_v2 }
  0x24   :  { %82 = vperm.xlu1 %279, %v29_v3   ;;  %240 = vmatpush3.msra.mxu0 %v95_v17 }
  0x25   :  { %241 = vmatprep.subr.mxu0 %v332_v2 }
  0x26   :  { %242 = vmatpush3.msra.mxu0 %v94_v19 }
  0x27   :  { %243 = vmatprep.subr.mxu0 %v332_v2 }
  0x28   :  { %244 = vmatpush3.msra.mxu0 %v93_v21 }
  0x29   :  { %245 = vmatprep.subr.mxu0 %v332_v2 }
  0x2a   :  { %246 = vmatpush3.msra.mxu0 %v92_v22 }
  0x2b   :  { %247 = vmatprep.subr.mxu0 %v332_v2 }
  0x2c   :  { %248 = vmatpush3.msra.mxu0 %v91_v23 }
  0x2d   :  { %249 = vmatprep.subr.mxu0 %v332_v2 }
  0x2e   :  { %250 = vmatpush3.msra.mxu0 %v90_v24 }
  0x2f   :  { %251 = vmatprep.subr.mxu0 %v332_v2 }
  0x30   :  { %252 = vmatpush3.msra.mxu0 %v89_v25 }
  0x31   :  { %253 = vmatprep.subr.mxu0 %v332_v2 }
  0x32   :  { %254 = vmatpush3.msra.mxu0 %v88_v26 }
  0x8b   :  { %v48_v29 = vpop.permute.xlu1 %47 }
  0x8c   :  { %v34_v30 = vpop.permute.xlu0 %33  ;;  %vm49_vm2 = vcmp.eq.s32.totalorder %v31_v31, %v48_v29 }
  0x8d   :  { %vm35_vm1 = vcmp.eq.s32.totalorder %v31_v31, %v34_v30  ;;  %v200_v37 = vsel %vm49_vm2, 1.0, %v332_v2 }
  0x8e   :  { %v198_v34 = vsel %vm35_vm1, 1.0, %v332_v2 }
  0x90   :  { %v55_v32 = vpop.permute.xlu1 %54 }
  0x91   :  { %v41_v33 = vpop.permute.xlu0 %40  ;;  %vm56_vm4 = vcmp.eq.s32.totalorder %v31_v31, %v55_v32 }
  0x92   :  { %vm42_vm3 = vcmp.eq.s32.totalorder %v31_v31, %v41_v33  ;;  %v201_v41 = vsel %vm56_vm4, 1.0, %v332_v2 }
  0x93   :  { %v199_v35 = vsel %vm42_vm3, 1.0, %v332_v2 }
  0x94   :  { %v45_v36 = vadd.f32 %v199_v35, %v198_v34 }
  0x95   :  { %v62_v39 = vpop.permute.xlu1 %61 }
  0x96   :  { %v52_v38 = vadd.f32 %v200_v37, %v45_v36  ;;  %v69_v40 = vpop.permute.xlu0 %68  ;;  %vm63_vm5 = vcmp.eq.s32.totalorder %v31_v31, %v62_v39 }
  0x97   :  { %vm70_vm6 = vcmp.eq.s32.totalorder %v31_v31, %v69_v40  ;;  %v202_v43 = vsel %vm63_vm5, 1.0, %v332_v2 }
  0x98   :  { %v59_v42 = vadd.f32 %v201_v41, %v52_v38  ;;  %v203_v45 = vsel %vm70_vm6, 1.0, %v332_v2 }
  0x9a   :  { %v66_v44 = vadd.f32 %v202_v43, %v59_v42  ;;  %v76_v46 = vpop.permute.xlu1 %75 }
  0x9b   :  { %vm77_vm7 = vcmp.eq.s32.totalorder %v31_v31, %v76_v46 }
  0x9c   :  { %v73_v47 = vadd.f32 %v203_v45, %v66_v44  ;;  %v204_v48 = vsel %vm77_vm7, 1.0, %v332_v2  ;;  %v179_v53 = vpop.permute.xlu0 %178 }
  0x9e   :  { %v80_v50 = vadd.f32 %v204_v48, %v73_v47 }
  0x9f   :  { %v83_v49 = vpop.permute.xlu1 %82 }
  0xa0   :  { %vm84_vm8 = vcmp.eq.s32.totalorder %v31_v31, %v83_v49 }
  0xa1   :  { %v205_v51 = vsel %vm84_vm8, 1.0, %v332_v2 }
  0xa2   :  { %v87_v52 = vadd.f32 %v205_v51, %v80_v50 }
  0xa4   :  { %256 = vmatmul.mubr.f32.vlgmr.msra.gmra.mxu0 %v87_v52 }
 0x164   :  { %v170_v54 = vpop.f32.mrf.mxu0 }
 0x165   :  { %v181_v55 = vmul.f32 %v179_v53, %v170_v54 }
 0x166   :  { %v257_v56 = vpop.f32.mrf.mxu0 }
 0x167   :  { %182 = vst [vmem:[#allocation5] sm:$0xff] %v181_v55 }
 0x168   :  { %314 = shalt.err (!%p311_p9)
}
 0x169   :  { %192 = dma.vmem_to_hbm [thread:$0]  %s190_s21, 128, %s401_s3, [#allocation4]  }
 0x16a   :  { %325 = dma.done.wait [#allocation4], 128  }
 0x16b   :  { %326 = vsyncadd [#allocation4], 4294967168 }
 0x16c   :  { %196 = vsyncpa [#allocation3], 1 }
 0x16d   :  { %197 = vsyncpa [#allocation4], 1 }

</bundles_post_ra>
